<compile_context>
chip_gen: v6e
topology: v6e:2x2x1
jax: 0.10.0
libtpu: 0.0.40
codegen_flags: <defaults>
</compile_context>

<pallas_src>
import jax
import jax.numpy as jnp
from jax import lax
from jax.experimental import pallas as pl
from jax.experimental.pallas import tpu as pltpu


NEG_SLOPE = 0.01  # PyTorch nn.LeakyReLU default negative_slope


def _leaky_relu(x):
    return jnp.where(x >= 0, x, NEG_SLOPE * x)


def discriminator_kernel(xT_ref, w1_ref, b1_ref, w2_ref, b2_ref, w3t_ref, b3_ref,
                         o_ref):
    # Shapes (transposed, batch on lanes):
    #   xT_ref : (in_f, TB)         w1_ref : (hid, in_f)   b1_ref : (hid, 1)
    #   w2_ref : (hid, hid)         b2_ref : (hid, 1)
    #   w3t_ref: (hid, out_f)       b3_ref : (out_f, 1)
    #   o_ref  : (out_f, TB)
    xT = xT_ref[...].astype(jnp.float32)                  # (in_f, TB)
    w1 = w1_ref[...]
    in_f = w1.shape[1]
    out_f = o_ref.shape[0]

    # ---- Layer 1 on the VPU (K = in_f = 2 would waste >98% of any MXU). ----
    # Outer-product style broadcast MACs keep everything lane-dense [hid, TB].
    h1 = w1[:, 0:1] * xT[0:1, :]
    for k in range(1, in_f):                              # static unroll (in_f tiny)
        h1 = h1 + w1[:, k:k + 1] * xT[k:k + 1, :]
    h1 = _leaky_relu(h1 + b1_ref[...])                    # (hid, TB)

    # ---- Layer 2 (hid x hid) on the MXU. ----
    h2 = jnp.dot(w2_ref[...], h1, preferred_element_type=jnp.float32) + b2_ref[...]
    h2 = _leaky_relu(h2)                                  # (hid, TB)

    # ---- Layer 3 (out_f x hid). ----
    if out_f == 1:
        # VPU multiply + XLU sublane reduction: skips a second dependent MXU
        # round trip on this latency-bound path.
        h3 = jnp.sum(w3t_ref[...] * h2, axis=0, keepdims=True) + b3_ref[...]
    else:
        # Generic fallback: contract over the hidden axis without transposing.
        h3 = lax.dot_general(w3t_ref[...], h2, (((0,), (0,)), ((), ())),
                             preferred_element_type=jnp.float32) + b3_ref[...]

    # ---- Sigmoid: exp on the EUP + approximate reciprocal on the EUP. ----
    out = pl.reciprocal(1.0 + jnp.exp(-h3), approx=True)  # (out_f, TB)
    o_ref[...] = out.astype(o_ref.dtype)


def discriminator_forward(x, params, *, tile_b=512):
    """x: [B, input_size] float32. params in PyTorch layout:
       W1 [hid,in], b1 [hid], W2 [hid,hid], b2 [hid], W3 [out,hid], b3 [out]."""
    B, in_f = x.shape
    hid = params["W1"].shape[0]
    out_f = params["W3"].shape[0]

    tile_b = min(tile_b, B)
    assert B % tile_b == 0, "pad batch to a multiple of tile_b"
    assert tile_b == B or tile_b % 128 == 0, "tile_b must be lane-aligned (128)"

    # Layout plumbing (outside the kernel): batch goes on the lane axis.
    x_t = x.T                                   # (in_f, B)
    w3t = params["W3"].T                        # (hid, out_f)
    b1 = params["b1"].reshape(hid, 1)
    b2 = params["b2"].reshape(hid, 1)
    b3 = params["b3"].reshape(out_f, 1)

    grid = (B // tile_b,)

    # Params are tiny -> full-array blocks replicated to every grid step.
    def full(a):
        return pl.BlockSpec(a.shape, lambda i, _nd=a.ndim: (0,) * _nd)

    out_t = pl.pallas_call(
        discriminator_kernel,
        out_shape=jax.ShapeDtypeStruct((out_f, B), jnp.float32),
        grid_spec=pltpu.PrefetchScalarGridSpec(
            num_scalar_prefetch=0,
            grid=grid,
            in_specs=[
                pl.BlockSpec((in_f, tile_b), lambda i: (0, i)),   # x tile (batch on lanes)
                full(params["W1"]), full(b1),
                full(params["W2"]), full(b2),
                full(w3t), full(b3),
            ],
            out_specs=pl.BlockSpec((out_f, tile_b), lambda i: (0, i)),
        ),
        compiler_params=pltpu.CompilerParams(
            dimension_semantics=("parallel",)),   # shards batch across v7x's 2 TCs
    )(x_t, params["W1"], b1, params["W2"], b2, w3t, b3)

    return out_t.T                               # (B, out_f)


def init_params(key, input_size=2, hidden_size=25, output_size=1):
    ks = jax.random.split(key, 6)

    def lin(kw, kb, fan_in, fan_out):
        # Deterministic synthetic init (uniform, PyTorch-like bound 1/sqrt(fan_in)),
        # stored in PyTorch nn.Linear layout: weight [out, in], bias [out].
        bound = 1.0 / jnp.sqrt(jnp.float32(fan_in))
        W = jax.random.uniform(kw, (fan_out, fan_in), jnp.float32, -bound, bound)
        b = jax.random.uniform(kb, (fan_out,), jnp.float32, -bound, bound)
        return W, b

    W1, b1 = lin(ks[0], ks[1], input_size, hidden_size)
    W2, b2 = lin(ks[2], ks[3], hidden_size, hidden_size)
    W3, b3 = lin(ks[4], ks[5], hidden_size, output_size)
    return dict(W1=W1, b1=b1, W2=W2, b2=b2, W3=W3, b3=b3)


def reference_forward(x, p):
    def lrelu(v):
        return jnp.where(v >= 0, v, NEG_SLOPE * v)

    h1 = lrelu(x @ p["W1"].T + p["b1"])
    h2 = lrelu(h1 @ p["W2"].T + p["b2"])
    return jax.nn.sigmoid(h2 @ p["W3"].T + p["b3"])


if __name__ == "__main__":
    key = jax.random.PRNGKey(0)
    k_x, k_p = jax.random.split(key)

    # Module defaults; B matches the module's minibatch_size.
    B, INPUT, HIDDEN, OUTPUT = 512, 2, 25, 1
    x = jax.random.normal(k_x, (B, INPUT), jnp.float32)
    params = init_params(k_p, INPUT, HIDDEN, OUTPUT)

    # tile_b=256 -> grid=(2,) "parallel": both v7x TensorCores get work while the
    # per-step overhead stays negligible; on v5e/v6e it simply runs two steps.
    out = discriminator_forward(x, params, tile_b=256)
    out = jax.block_until_ready(out)

    ref = reference_forward(x, params)
    assert out.shape == (B, OUTPUT)
    # Tolerance loosened vs 1e-5 because the sigmoid uses the ~12-bit-accurate
    # EUP approximate reciprocal (abs error <~ 3e-4 on values in [0, 1]).
    assert jnp.allclose(out, ref, atol=2e-3, rtol=2e-3), "mismatch vs reference"

    print("KERNEL_OK")
</pallas_src>

<mosaic_0001>
module attributes {stable_mosaic.version = 11 : i64} {
  func.func @discriminator_kernel(%arg0: i32, %arg1: memref<2x256xf32, #tpu.memory_space<vmem>>, %arg2: memref<25x2xf32, #tpu.memory_space<vmem>>, %arg3: memref<25x1xf32, #tpu.memory_space<vmem>>, %arg4: memref<25x25xf32, #tpu.memory_space<vmem>>, %arg5: memref<25x1xf32, #tpu.memory_space<vmem>>, %arg6: memref<25x1xf32, #tpu.memory_space<vmem>>, %arg7: memref<1x1xf32, #tpu.memory_space<vmem>>, %arg8: memref<1x256xf32, #tpu.memory_space<vmem>>) attributes {dimension_semantics = [#tpu.dimension_semantics<parallel>], iteration_bounds = array<i64: 2>, scalar_prefetch = 0 : i64, scratch_operands = 0 : i64, tpu.core_type = #tpu.core_type<tc>, window_params = [{transform_indices = @transform_0, window_bounds = array<i64: 2, 256>}, {pipeline_mode = #tpu.pipeline_mode<synchronous>, transform_indices = @transform_1, window_bounds = array<i64: 25, 2>}, {pipeline_mode = #tpu.pipeline_mode<synchronous>, transform_indices = @transform_2, window_bounds = array<i64: 25, 1>}, {pipeline_mode = #tpu.pipeline_mode<synchronous>, transform_indices = @transform_3, window_bounds = array<i64: 25, 25>}, {pipeline_mode = #tpu.pipeline_mode<synchronous>, transform_indices = @transform_4, window_bounds = array<i64: 25, 1>}, {pipeline_mode = #tpu.pipeline_mode<synchronous>, transform_indices = @transform_5, window_bounds = array<i64: 25, 1>}, {pipeline_mode = #tpu.pipeline_mode<synchronous>, transform_indices = @transform_6, window_bounds = array<i64: 1, 1>}, {transform_indices = @transform_7, window_bounds = array<i64: 1, 256>}]} {
    %c0 = arith.constant 0 : index
    %c0_0 = arith.constant 0 : index
    %0 = vector.load %arg1[%c0, %c0_0] : memref<2x256xf32, #tpu.memory_space<vmem>>, vector<2x256xf32>
    %c0_1 = arith.constant 0 : index
    %c0_2 = arith.constant 0 : index
    %1 = vector.load %arg2[%c0_1, %c0_2] : memref<25x2xf32, #tpu.memory_space<vmem>>, vector<25x2xf32>
    %2 = vector.extract_strided_slice %1 {offsets = [0, 0], sizes = [25, 1], strides = [1, 1]} : vector<25x2xf32> to vector<25x1xf32>
    %3 = vector.extract_strided_slice %0 {offsets = [0, 0], sizes = [1, 256], strides = [1, 1]} : vector<2x256xf32> to vector<1x256xf32>
    %4 = vector.broadcast %2 : vector<25x1xf32> to vector<25x256xf32>
    %5 = vector.broadcast %3 : vector<1x256xf32> to vector<25x256xf32>
    %6 = arith.mulf %4, %5 : vector<25x256xf32>
    %7 = vector.extract_strided_slice %1 {offsets = [0, 1], sizes = [25, 1], strides = [1, 1]} : vector<25x2xf32> to vector<25x1xf32>
    %8 = vector.extract_strided_slice %0 {offsets = [1, 0], sizes = [1, 256], strides = [1, 1]} : vector<2x256xf32> to vector<1x256xf32>
    %9 = vector.broadcast %7 : vector<25x1xf32> to vector<25x256xf32>
    %10 = vector.broadcast %8 : vector<1x256xf32> to vector<25x256xf32>
    %11 = arith.mulf %9, %10 : vector<25x256xf32>
    %12 = arith.addf %6, %11 : vector<25x256xf32>
    %c0_3 = arith.constant 0 : index
    %c0_4 = arith.constant 0 : index
    %13 = vector.load %arg3[%c0_3, %c0_4] : memref<25x1xf32, #tpu.memory_space<vmem>>, vector<25x1xf32>
    %14 = vector.broadcast %13 : vector<25x1xf32> to vector<25x256xf32>
    %15 = arith.addf %12, %14 : vector<25x256xf32>
    %cst = arith.constant 0.000000e+00 : f32
    %16 = vector.broadcast %cst : f32 to vector<25x256xf32>
    %17 = arith.cmpf oge, %15, %16 : vector<25x256xf32>
    %cst_5 = arith.constant 0.00999999977 : f32
    %18 = vector.broadcast %cst_5 : f32 to vector<25x256xf32>
    %19 = arith.mulf %18, %15 : vector<25x256xf32>
    %20 = arith.select %17, %15, %19 : vector<25x256xi1>, vector<25x256xf32>
    %c0_6 = arith.constant 0 : index
    %c0_7 = arith.constant 0 : index
    %21 = vector.load %arg4[%c0_6, %c0_7] : memref<25x25xf32, #tpu.memory_space<vmem>>, vector<25x25xf32>
    %cst_8 = arith.constant dense<0.000000e+00> : vector<25x256xf32>
    %22 = tpu.matmul %21, %20, %cst_8 {dimension_numbers = #tpu.dot_dimension_numbers<[1], [0], [0], [1], [0, 0, 1, 1], [], []>} : vector<25x25xf32>, vector<25x256xf32>, vector<25x256xf32> -> vector<25x256xf32>
    %c0_9 = arith.constant 0 : index
    %c0_10 = arith.constant 0 : index
    %23 = vector.load %arg5[%c0_9, %c0_10] : memref<25x1xf32, #tpu.memory_space<vmem>>, vector<25x1xf32>
    %24 = vector.broadcast %23 : vector<25x1xf32> to vector<25x256xf32>
    %25 = arith.addf %22, %24 : vector<25x256xf32>
    %cst_11 = arith.constant 0.000000e+00 : f32
    %26 = vector.broadcast %cst_11 : f32 to vector<25x256xf32>
    %27 = arith.cmpf oge, %25, %26 : vector<25x256xf32>
    %cst_12 = arith.constant 0.00999999977 : f32
    %28 = vector.broadcast %cst_12 : f32 to vector<25x256xf32>
    %29 = arith.mulf %28, %25 : vector<25x256xf32>
    %30 = arith.select %27, %25, %29 : vector<25x256xi1>, vector<25x256xf32>
    %c0_13 = arith.constant 0 : index
    %c0_14 = arith.constant 0 : index
    %31 = vector.load %arg6[%c0_13, %c0_14] : memref<25x1xf32, #tpu.memory_space<vmem>>, vector<25x1xf32>
    %32 = vector.broadcast %31 : vector<25x1xf32> to vector<25x256xf32>
    %33 = arith.mulf %32, %30 : vector<25x256xf32>
    %cst_15 = arith.constant dense<0.000000e+00> : vector<256xf32>
    %34 = vector.multi_reduction <add>, %33, %cst_15 [0] : vector<25x256xf32> to vector<256xf32>
    %35 = vector.shape_cast %34 : vector<256xf32> to vector<1x256xf32>
    %c0_16 = arith.constant 0 : index
    %c0_17 = arith.constant 0 : index
    %36 = vector.load %arg7[%c0_16, %c0_17] : memref<1x1xf32, #tpu.memory_space<vmem>>, vector<1x1xf32>
    %37 = vector.broadcast %36 : vector<1x1xf32> to vector<1x256xf32>
    %38 = arith.addf %35, %37 : vector<1x256xf32>
    %cst_18 = arith.constant 0.000000e+00 : f32
    %39 = vector.broadcast %cst_18 : f32 to vector<1x256xf32>
    %40 = arith.subf %39, %38 : vector<1x256xf32>
    %41 = math.exp %40 : vector<1x256xf32>
    %cst_19 = arith.constant 1.000000e+00 : f32
    %42 = vector.broadcast %cst_19 : f32 to vector<1x256xf32>
    %43 = arith.addf %42, %41 : vector<1x256xf32>
    %44 = tpu.reciprocal %43 {approx = true} : vector<1x256xf32> -> vector<1x256xf32>
    %c0_20 = arith.constant 0 : index
    %c0_21 = arith.constant 0 : index
    %45 = vector.load %arg8[%c0_20, %c0_21] : memref<1x256xf32, #tpu.memory_space<vmem>>, vector<1x256xf32>
    tpu.vector_store %arg8[%c0_20, %c0_21], %44 {strides = array<i32>} : memref<1x256xf32, #tpu.memory_space<vmem>>, vector<1x256xf32>,
    return
  }
  func.func @transform_0(%arg0: i32) -> (i32, i32) {
    %c0_i32 = arith.constant 0 : i32
    %c0_i32_0 = arith.constant 0 : i32
    return %c0_i32, %arg0 : i32, i32
  }
  func.func @transform_1(%arg0: i32) -> (i32, i32) {
    %c0_i32 = arith.constant 0 : i32
    %c0_i32_0 = arith.constant 0 : i32
    %c0_i32_1 = arith.constant 0 : i32
    return %c0_i32, %c0_i32_0 : i32, i32
  }
  func.func @transform_2(%arg0: i32) -> (i32, i32) {
    %c0_i32 = arith.constant 0 : i32
    %c0_i32_0 = arith.constant 0 : i32
    %c0_i32_1 = arith.constant 0 : i32
    return %c0_i32, %c0_i32_0 : i32, i32
  }
  func.func @transform_3(%arg0: i32) -> (i32, i32) {
    %c0_i32 = arith.constant 0 : i32
    %c0_i32_0 = arith.constant 0 : i32
    %c0_i32_1 = arith.constant 0 : i32
    return %c0_i32, %c0_i32_0 : i32, i32
  }
  func.func @transform_4(%arg0: i32) -> (i32, i32) {
    %c0_i32 = arith.constant 0 : i32
    %c0_i32_0 = arith.constant 0 : i32
    %c0_i32_1 = arith.constant 0 : i32
    return %c0_i32, %c0_i32_0 : i32, i32
  }
  func.func @transform_5(%arg0: i32) -> (i32, i32) {
    %c0_i32 = arith.constant 0 : i32
    %c0_i32_0 = arith.constant 0 : i32
    %c0_i32_1 = arith.constant 0 : i32
    return %c0_i32, %c0_i32_0 : i32, i32
  }
  func.func @transform_6(%arg0: i32) -> (i32, i32) {
    %c0_i32 = arith.constant 0 : i32
    %c0_i32_0 = arith.constant 0 : i32
    %c0_i32_1 = arith.constant 0 : i32
    return %c0_i32, %c0_i32_0 : i32, i32
  }
  func.func @transform_7(%arg0: i32) -> (i32, i32) {
    %c0_i32 = arith.constant 0 : i32
    %c0_i32_0 = arith.constant 0 : i32
    return %c0_i32, %arg0 : i32, i32
  }
}

</mosaic_0001>

<bundles_post_ra>
// kernel: tpu_custom_call.1
= control target key start
LH: loop header
LB: loop body
LE: loop exit
PB: predicated region body
PF: predicated region fallthrough
CT: control target
= control target key end

     0   :  { %s1140_s0 = inlined_call_operand.vmem [shape: f32[2,512], index: 0, kind: input, shape index: {}]   ;;  %s1141_s1 = inlined_call_operand.vmem [shape: f32[25,2], index: 1, kind: input, shape index: {}]   ;;  %s1142_s2 = inlined_call_operand.vmem [shape: f32[25,1], index: 2, kind: input, shape index: {}]   ;;  %s1143_s3 = inlined_call_operand.vmem [shape: f32[25,25], index: 3, kind: input, shape index: {}]   ;;  %s1144_s4 = inlined_call_operand.vmem [shape: f32[25,1], index: 4, kind: input, shape index: {}]   ;;  %s1145_s5 = inlined_call_operand.vmem [shape: f32[25,1], index: 5, kind: input, shape index: {}]   ;;  %s1146_s6 = inlined_call_operand.<no memory space> [shape: f32[1,1], index: 6, kind: input, shape index: {}]   ;;  %s1147_s7 = inlined_call_operand.hbm [shape: f32[1,512], index: 7, kind: output, shape index: {}]  }
   0x1   :  { %v12_v0 = vstv %s1146_s6 }
   0x2   :  { %13 = vst [vmem:[#allocation2] sm:$0x1] %v12_v0 }
   0x3   :  { %14 = vsyncpa [#allocation4], 0 }
   0x4   :  { %16 = vsyncpa [#allocation4 + $0x1], 0  ;;  %s967_s26 = smov 0   ;;  %s969_s27 = smov 0  }
   0x5   :  { %s971_s28 = smov 0   ;;  %s973_s29 = smov 0  }
   0x6 LB: > { %s988_s6 = sadd.s32 4294967295, %s917_s29   ;;  %s772_s30 = sadd.s32 4294967294, %s917_s29   ;;  %s917_s29 = sphi %s973_s29, %s1153_s29   ;;  %s913_s28 = sphi %s971_s28, %s1152_s28   ;;  %s909_s27 = sphi %s969_s27, %s1151_s27   ;;  %s905_s26 = sphi %s967_s26, %s1150_s26  }
   0x7   : > { %s992_s8 = sadd.s32 1, %s917_s29   ;;  %s181_s9 = sadd.s32 1, %s913_s28 }
   0x8   : > { %s178_s10 = ssub.s32 %s917_s29, %s992_s8  ;;  %p191_p0 = scmp.ne.s32.totalorder %s913_s28, %s909_s27 }
   0x9   : > { %p179_p1 = scmp.eq.s32.totalorder %s178_s10, 0  ;;  %p192_p2 = scmp.eq.s32.totalorder %s988_s6, 1 }
   0xa   : > { %p197_p3 = scmp.ne.s32.totalorder %s909_s27, %s905_s26  ;;  %p198_p4 = scmp.eq.s32.totalorder %s772_s30, 1 }
   0xb   : > { %s1003_s11 = scalar_select %p179_p1, %s913_s28, %s181_s9  }
   0xc   : > { %p1005_p5 = por %p192_p2, %p191_p0  ;;  %p1009_p6 = por %p198_p4, %p197_p3 }
   0xd   : > { %p775_p7 = scmp.ge.s32.totalorder %s917_s29, 1  ;;  %p243_p8 = scmp.lt.s32.totalorder %s917_s29, 3 }
   0xf   : > { %p244_p9 = pnand %p775_p7, %p243_p8 }
  0x10   : > { %s777_s16 = sshll.u32 (!%p244_p9), %s988_s6, 1  ;;  %s272_s14 = sand.u32 (!%p244_p9), 1, %s909_s27  }
  0x11   : > { %247 = sbr.rel (%p244_p9) target bundleno = 463 (0x1cf), region = 48  ;;  %p276_p10 = scmp.lt.s32.totalorder (!%p244_p9), %s777_s16, 3 }
  0x12   : > { %s776_s15 = sshll.u32 (!%p244_p9), %s272_s14, 1  ;;  %s699_s22 = scalar_lea.sflag (!%p244_p9), [#allocation4], %s272_s14 }
  0x13   : > { %s923_s24 = smov (!%p244_p9), [#allocation3]  }
  0x16   : > { %v286_v1 = vld [vmem:[%s1141_s1 + $0x18] sm:$0x1]  ;;  %v285_v2 = vld [vmem:[%s1141_s1 + $0x10] sm:$0xff]  ;;  %v919_v3 = vmov 1   ;;  %v920_v4 = vmov 0   ;;  %v284_v5 = vld [vmem:[%s1141_s1 + $0x8] sm:$0xff]  ;;  %v308_v21 = vlaneseq }
  0x17   : > { %842 = vset.pattern.permute.xlu0 %v919_v3  ;;  %843 = vset.pattern.permute.xlu1 %v920_v4  ;;  %v283_v6 = vld [vmem:[%s1141_s1] sm:$0xff]  ;;  %v387_v7 = vld [vmem:[%s1142_s2 + $0x18] sm:$0x1]  ;;  %v385_v8 = vld [vmem:[%s1142_s2 + $0x8] sm:$0xff]  ;;  %v921_v16 = vmov 0.0   ;;  %s1155_s16 = smov (!%p276_p10, %s777_s16), 3 }
  0x18   : > { %347 = vperm.xlu0 %842, %v286_v1   ;;  %299 = vperm.xlu1 %843, %v285_v2   ;;  %v444_v9 = vld [vmem:[%s1144_s4] sm:$0xff]  ;;  %v386_v10 = vld [vmem:[%s1142_s2 + $0x10] sm:$0xff]  ;;  %v445_v14 = vld [vmem:[%s1144_s4 + $0x8] sm:$0xff]  ;;  %s778_s17 = sshll.u32 %s1155_s16, 1  ;;  %v1067_v22 = vshrl.u32 %v308_v21, 7  ;;  %vm481_vm0 = vcmask 1040384  }
  0x19   : > { %v446_v11 = vld [vmem:[%s1144_s4 + $0x10] sm:$0xff]  ;;  %v384_v12 = vld [vmem:[%s1142_s2] sm:$0xff]  ;;  %552 = vmatprep.mubr.f32.mxu0 %v921_v16  ;;  %564 = vmatprep.mubr.f32.mxu1 %v921_v16  ;;  %v447_v17 = vld [vmem:[%s1144_s4 + $0x18] sm:$0x1]  ;;  %s279_s20 = scalar_lea.vmem %s1140_s0, %s778_s17  ;;  %vm468_vm9 = vcmask 203776   ;;  %s790_s16 = sshll.u32 %s988_s6, 5 }
  0x1a   : > { %v601_v13 = vld [vmem:[%s1145_s5] sm:$0xff]  ;;  %v603_v15 = vld [vmem:[%s1145_s5 + $0x10] sm:$0xff]  ;;  %v602_v19 = vld [vmem:[%s1145_s5 + $0x8] sm:$0xff]  ;;  %v352_v23 = vsub.s32 1, %v1067_v22  ;;  %v356_v24 = vsub.s32 3, %v1067_v22  ;;  %v1075_v25 = vsub.s32 0, %v1067_v22  ;;  %s711_s21 = scalar_lea.hbm %s1147_s7, %s790_s16 }
  0x1b   : > { %v653_v18 = vld [vmem:[#allocation2] sm:$0x1]  ;;  %v604_v20 = vld [vmem:[%s1145_s5 + $0x18] sm:$0x1]  ;;  %v314_v26 = vsub.s32 2, %v1067_v22  ;;  %s274_s17 = scalar_lea.vmem [#allocation3], %s776_s15 }
  0x1c   : > { %844 = vset.pattern.permute.xlu1 %v919_v3  ;;  %339 = vperm.xlu0 %842, %v284_v5   ;;  %v282_v29 = vld [vmem:[%s279_s20] sm:$0xf]  ;;  %s713_s18 = sshll.u32 %s274_s17, 4  ;;  %s861_s6 = sshll.u32 %s923_s24, 4  ;;  %s714_s18 = int_to_ptr.vmem [resolvable:$true] %s713_s18  ;;  %s862_s6 = int_to_ptr.vmem [resolvable:$false] %s861_s6 }
  0x1d   : > { %343 = vperm.xlu1 %844, %v285_v2   ;;  %v353_v30 = vrot.slane %v282_v29, %v352_v23  ;;  %v357_v31 = vrot.slane %v282_v29, %v356_v24  ;;  %v311_v32 = vrot.slane %v282_v29, %v1075_v25  ;;  %v315_v33 = vrot.slane %v282_v29, %v314_v26  ;;  %s857_s23 = scalar_lea.vmem %s714_s18, 32  ;;  %s863_s25 = scalar_lea.vmem %s862_s6, 64 }
  0x1e   : > { %p858_p11 = scmp.ne.s32.totalorder %s714_s18, %s857_s23  ;;  %p864_p0 = scmp.lt.s32.totalorder %s714_s18, %s862_s6 }
  0x1f   : > { %v363_v36 = vrot.slane %v353_v30, %v352_v23  ;;  %v367_v37 = vrot.slane %v357_v31, %v352_v23  ;;  %v321_v38 = vrot.slane %v311_v32, %v1075_v25  ;;  %v325_v39 = vrot.slane %v315_v33, %v1075_v25  ;;  %p865_p1 = scmp.lt.s32.totalorder %s863_s25, %s857_s23 }
  0x20   : > { %846 = vset.pattern.permute.xlu0 %v920_v4  ;;  %p859_p12 = pnand %p858_p11, %p1005_p5 }
  0x21   : > { %845 = vset.pattern.permute.xlu1 %v920_v4  ;;  %304 = vperm.xlu0 %846, %v286_v1   ;;  %p866_p2 = por %p865_p1, %p864_p0 }
  0x22   : > { %294 = vperm.xlu1 %845, %v284_v5   ;;  %p860_p13 = pneg %p859_p12 }
  0x24   : > { %p867_p3 = pnand %p866_p2, %p860_p13 }
  0x25   : > { %289 = vperm.xlu0 %846, %v283_v6  }
  0x26   : > { %405 = vperm.xlu1 %845, %v387_v7  }
  0x29   : > { %395 = vperm.xlu0 %846, %v385_v8  }
  0x2a   : > { %847 = vset.pattern.permute.xlu1 %v919_v3 }
  0x2b   : > { %335 = vperm.xlu1 %847, %v283_v6  }
  0x2d   : > { %450 = vperm.xlu0 %846, %v444_v9  }
  0x2f   : > { %848 = vset.pattern.permute.xlu1 %v920_v4 }
  0x30   : > { %400 = vperm.xlu1 %848, %v386_v10  }
  0x31   : > { %460 = vperm.xlu0 %846, %v446_v11  }
  0x34   : > { %390 = vperm.xlu1 %848, %v384_v12  }
  0x35   : > { %607 = vperm.xlu0 %846, %v601_v13  }
  0x38   : > { %455 = vperm.xlu1 %848, %v445_v14  }
  0x39   : > { %617 = vperm.xlu0 %846, %v603_v15  }
  0x3c   : > { %465 = vperm.xlu1 %848, %v447_v17  }
  0x3d   : > { %656 = vperm.xlu0 %846, %v653_v18  }
  0x40   : > { %612 = vperm.xlu1 %848, %v602_v19  }
  0x44   : > { %622 = vperm.xlu1 %848, %v604_v20  }
  0x93   : > { %v300_v27 = vpop.permute.xlu1 %299  ;;  %v348_v28 = vpop.permute.xlu0 %347 }
  0x94   : > { %v374_v40 = vmul.f32 %v363_v36, %v348_v28  ;;  %v375_v41 = vmul.f32 %v367_v37, %v348_v28  ;;  %v330_v0 = vmul.f32 %v321_v38, %v300_v27  ;;  %v331_v2 = vmul.f32 %v325_v39, %v300_v27 }
  0x97   : > { %v340_v34 = vpop.permute.xlu0 %339 }
  0x98   : > { %v344_v35 = vpop.permute.xlu1 %343  ;;  %v370_v52 = vmul.f32 %v363_v36, %v340_v34  ;;  %v371_v53 = vmul.f32 %v367_v37, %v340_v34 }
  0x99   : > { %v372_v58 = vmul.f32 %v363_v36, %v344_v35  ;;  %v373_v59 = vmul.f32 %v367_v37, %v344_v35 }
  0x9b   : > { %v380_v9 = vadd.f32 %v372_v58, %v330_v0  ;;  %v381_v10 = vadd.f32 %v373_v59, %v331_v2 }
  0x9c   : > { %v305_v42 = vpop.permute.xlu0 %304 }
  0x9d   : > { %v332_v43 = vmul.f32 %v321_v38, %v305_v42  ;;  %v333_v44 = vmul.f32 %v325_v39, %v305_v42  ;;  %v295_v45 = vpop.permute.xlu1 %294 }
  0x9e   : > { %v328_v54 = vmul.f32 %v321_v38, %v295_v45  ;;  %v329_v55 = vmul.f32 %v325_v39, %v295_v45 }
  0x9f   : > { %v382_v46 = vadd.f32 %v374_v40, %v332_v43  ;;  %v383_v47 = vadd.f32 %v375_v41, %v333_v44 }
  0xa0   : > { %v290_v48 = vpop.permute.xlu0 %289  ;;  %v379_v1 = vadd.f32 %v371_v53, %v329_v55  ;;  %v378_v4 = vadd.f32 %v370_v52, %v328_v54 }
  0xa1   : > { %v406_v49 = vpop.permute.xlu1 %405  ;;  %v326_v3 = vmul.f32 %v321_v38, %v290_v48  ;;  %v327_v5 = vmul.f32 %v325_v39, %v290_v48  ;;  %v441_v38 = vld [vmem:[%s1143_s3 + $0x8] sm:$0xff]  ;;  %v443_v39 = vld [vmem:[%s1143_s3 + $0x18] sm:$0x1] }
  0xa2   : > { %v414_v50 = vadd.f32 %v406_v49, %v382_v46  ;;  %v415_v51 = vadd.f32 %v406_v49, %v383_v47 }
  0xa4   : > { %vm423_vm1 = vcmp.ge.f32.partialorder %v415_v51, 0.0  ;;  %v431_v56 = vmul.f32 0.01, %v415_v51  ;;  %vm422_vm2 = vcmp.ge.f32.partialorder %v414_v50, 0.0  ;;  %v430_v57 = vmul.f32 0.01, %v414_v50  ;;  %v396_v60 = vpop.permute.xlu0 %395 }
  0xa5   : > { %v411_v6 = vadd.f32 %v396_v60, %v379_v1  ;;  %v410_v11 = vadd.f32 %v396_v60, %v378_v4 }
  0xa6   : > { %v336_v61 = vpop.permute.xlu1 %335  ;;  %v439_v62 = vsel %vm423_vm1, %v415_v51, %v431_v56  ;;  %v438_v63 = vsel %vm422_vm2, %v414_v50, %v430_v57 }
  0xa7   : > { %779 = vmatprep.subr.msk.mxu0 %vm481_vm0, %v439_v62  ;;  %791 = vmatprep.subr.msk.mxu1 %vm481_vm0, %v439_v62  ;;  %v368_v7 = vmul.f32 %v363_v36, %v336_v61  ;;  %v369_v8 = vmul.f32 %v367_v37, %v336_v61  ;;  %vm419_vm3 = vcmp.ge.f32.partialorder %v411_v6, 0.0  ;;  %v427_v18 = vmul.f32 0.01, %v411_v6  ;;  %v440_v36 = vld [vmem:[%s1143_s3] sm:$0xff]  ;;  %v442_v37 = vld [vmem:[%s1143_s3 + $0x10] sm:$0xff] }
  0xa8   : > { %780 = vmatpush1.msk.msra.mxu0 %vm481_vm0, %v438_v63  ;;  %795 = vmatpush1.msk.msra.mxu1 %vm481_vm0, %v438_v63  ;;  %vm418_vm6 = vcmp.ge.f32.partialorder %v410_v11, 0.0  ;;  %v426_v24 = vmul.f32 0.01, %v410_v11  ;;  %v451_v41 = vpop.permute.xlu0 %450 }
  0xa9   : > { %v376_v15 = vadd.f32 %v368_v7, %v326_v3  ;;  %v377_v17 = vadd.f32 %v369_v8, %v327_v5  ;;  %v435_v30 = vsel %vm419_vm3, %v411_v6, %v427_v18 }
  0xaa   : > { %v434_v33 = vsel %vm418_vm6, %v410_v11, %v426_v24 }
  0xab   : > { %v401_v12 = vpop.permute.xlu1 %400 }
  0xac   : > { %v412_v13 = vadd.f32 %v401_v12, %v380_v9  ;;  %v413_v14 = vadd.f32 %v401_v12, %v381_v10  ;;  %v461_v43 = vpop.permute.xlu0 %460 }
  0xae   : > { %vm421_vm4 = vcmp.ge.f32.partialorder %v413_v14, 0.0  ;;  %v429_v19 = vmul.f32 0.01, %v413_v14  ;;  %vm420_vm5 = vcmp.ge.f32.partialorder %v412_v13, 0.0  ;;  %v428_v20 = vmul.f32 0.01, %v412_v13 }
  0xaf   : > { %v391_v23 = vpop.permute.xlu1 %390 }
  0xb0   : > { %v408_v26 = vadd.f32 %v391_v23, %v376_v15  ;;  %v409_v27 = vadd.f32 %v391_v23, %v377_v17  ;;  %v437_v28 = vsel %vm421_vm4, %v413_v14, %v429_v19  ;;  %v436_v29 = vsel %vm420_vm5, %v412_v13, %v428_v20  ;;  %v608_v55 = vpop.permute.xlu0 %607 }
  0xb1   : > { %514 = vmatprep.subr.mxu0 %v437_v28  ;;  %792 = vmatprep.subr.mxu1 %v437_v28 }
  0xb2   : > { %515 = vmatpush1.msra.mxu0 %v436_v29  ;;  %796 = vmatpush1.msra.mxu1 %v436_v29  ;;  %vm417_vm7 = vcmp.ge.f32.partialorder %v409_v27, 0.0  ;;  %v425_v31 = vmul.f32 0.01, %v409_v27  ;;  %vm416_vm8 = vcmp.ge.f32.partialorder %v408_v26, 0.0  ;;  %v424_v32 = vmul.f32 0.01, %v408_v26 }
  0xb3   : > { %516 = vmatprep.subr.mxu0 %v435_v30  ;;  %793 = vmatprep.subr.mxu1 %v435_v30  ;;  %v456_v40 = vpop.permute.xlu1 %455 }
  0xb4   : > { %517 = vmatpush1.msra.mxu0 %v434_v33  ;;  %797 = vmatpush1.msra.mxu1 %v434_v33  ;;  %v433_v34 = vsel %vm417_vm7, %v409_v27, %v425_v31  ;;  %v432_v35 = vsel %vm416_vm8, %v408_v26, %v424_v32  ;;  %v618_v11 = vpop.permute.xlu0 %617 }
  0xb5   : > { %518 = vmatprep.subr.mxu0 %v433_v34  ;;  %794 = vmatprep.subr.mxu1 %v433_v34 }
  0xb6   : > { %519 = vmatpush1.msra.mxu0 %v432_v35  ;;  %798 = vmatpush1.msra.mxu1 %v432_v35 }
  0xb7   : > { %781 = vmatmul.mubr.msk.f32.vlgmr.msra.gmra.mxu0 %vm468_vm9, %v440_v36  ;;  %783 = vmatmul.mubr.msk.f32.vlgmr.msra.gmra.mxu1 %vm468_vm9, %v442_v37  ;;  %v466_v42 = vpop.permute.xlu1 %465 }
  0xb8   : > { %558 = vmatprep.mubr.f32.mxu0 %v921_v16  ;;  %570 = vmatprep.mubr.f32.mxu1 %v921_v16 }
  0xbb   : > { %782 = vmatmul.mubr.msk.f32.gmra.mxu0 %vm468_vm9, %v441_v38  ;;  %784 = vmatmul.mubr.msk.f32.gmra.mxu1 %vm468_vm9, %v443_v39  ;;  %v613_v49 = vpop.permute.xlu1 %612 }
  0xbf   : > { %v623_v7 = vpop.permute.xlu1 %622 }
 0x177   : > { %v554_v44 = vpop.f32.mrf.mxu0  ;;  %v566_v45 = vpop.f32.mrf.mxu1 }
 0x178   : > { %v555_v46 = vadd.f32 %v554_v44, %v451_v41  ;;  %v567_v47 = vadd.f32 %v566_v45, %v461_v43 }
 0x179   : > { %v556_v48 = vpop.f32.mrf.mxu0  ;;  %v568_v16 = vpop.f32.mrf.mxu1 }
 0x17a   : > { %vm577_vm10 = vcmp.ge.f32.partialorder %v555_v46, 0.0  ;;  %v585_v50 = vmul.f32 0.01, %v555_v46  ;;  %v589_v51 = vmul.f32 0.01, %v567_v47  ;;  %vm581_vm11 = vcmp.ge.f32.partialorder %v567_v47, 0.0 }
 0x17b   : > { %v557_v52 = vadd.f32 %v556_v48, %v451_v41  ;;  %v560_v53 = vpop.f32.mrf.mxu0  ;;  %v572_v54 = vpop.f32.mrf.mxu1  ;;  %v569_v57 = vadd.f32 %v568_v16, %v461_v43 }
 0x17c   : > { %v593_v56 = vsel %vm577_vm10, %v555_v46, %v585_v50  ;;  %v561_v58 = vadd.f32 %v560_v53, %v456_v40  ;;  %v573_v59 = vadd.f32 %v572_v54, %v466_v42  ;;  %v597_v63 = vsel %vm581_vm11, %v567_v47, %v589_v51  ;;  %v657_v41 = vpop.permute.xlu0 %656 }
 0x17d   : > { %v586_v60 = vmul.f32 0.01, %v557_v52  ;;  %v562_v61 = vpop.f32.mrf.mxu0  ;;  %v574_v62 = vpop.f32.mrf.mxu1  ;;  %vm578_vm12 = vcmp.ge.f32.partialorder %v557_v52, 0.0  ;;  %v625_v1 = vmul.f32 %v608_v55, %v593_v56  ;;  %vm582_vm15 = vcmp.ge.f32.partialorder %v569_v57, 0.0 }
 0x17e   : > { %vm579_vm13 = vcmp.ge.f32.partialorder %v561_v58, 0.0  ;;  %v587_v0 = vmul.f32 0.01, %v561_v58  ;;  %vm583_vm14 = vcmp.ge.f32.partialorder %v573_v59, 0.0  ;;  %v591_v2 = vmul.f32 0.01, %v573_v59 }
 0x17f   : > { %v563_v3 = vadd.f32 %v562_v61, %v456_v40  ;;  %v590_v4 = vmul.f32 0.01, %v569_v57  ;;  %v575_v6 = vadd.f32 %v574_v62, %v466_v42  ;;  %v594_v8 = vsel %vm578_vm12, %v557_v52, %v586_v60 }
 0x180   : > { %v595_v5 = vsel %vm579_vm13, %v561_v58, %v587_v0  ;;  %v599_v10 = vsel %vm583_vm14, %v573_v59, %v591_v2  ;;  %v629_v15 = vmul.f32 %v618_v11, %v597_v63  ;;  %v626_v23 = vmul.f32 %v608_v55, %v594_v8 }
 0x181   : > { %v627_v9 = vmul.f32 %v613_v49, %v595_v5  ;;  %vm580_vm1 = vcmp.ge.f32.partialorder %v563_v3, 0.0  ;;  %v631_v12 = vmul.f32 %v623_v7, %v599_v10  ;;  %v588_v13 = vmul.f32 0.01, %v563_v3 }
 0x182   : > { %vm584_vm2 = vcmp.ge.f32.partialorder %v575_v6, 0.0  ;;  %v592_v14 = vmul.f32 0.01, %v575_v6  ;;  %v598_v18 = vsel %vm582_vm15, %v569_v57, %v590_v4  ;;  %v662_v44 = vrot.slane %v657_v41, %v1075_v25 }
 0x183   : > { %v633_v17 = vadd.f32 %v627_v9, %v625_v1  ;;  %v596_v19 = vsel %vm580_vm1, %v563_v3, %v588_v13  ;;  %v635_v27 = vsel %vm481_vm0, %v631_v12, 0.0  ;;  %v630_v29 = vmul.f32 %v618_v11, %v598_v18 }
 0x184   : > { %v600_v20 = vsel %vm584_vm2, %v575_v6, %v592_v14  ;;  %v628_v26 = vmul.f32 %v613_v49, %v596_v19  ;;  %v922_v25 = vmov 1966171168  }
 0x185   : > { %v634_v24 = vadd.f32 %v633_v17, %v629_v15  ;;  %v632_v28 = vmul.f32 %v623_v7, %v600_v20  ;;  %v679_v58 = vunpack.c.l.s4 %v922_v25 }
 0x186   : > { %v643_v31 = vadd.f32 %v628_v26, %v626_v23 }
 0x187   : > { %v636_v30 = vadd.f32 %v635_v27, %v634_v24  ;;  %v645_v34 = vsel %vm481_vm0, %v632_v28, 0.0  ;;  %v680_v59 = vunpack.c.0.s8 %v679_v58  ;;  %vm695_vm0 = vcmp.lt.s32.totalorder %v308_v21, 256 }
 0x188   : > { %v644_v33 = vadd.f32 %v643_v31, %v630_v29 }
 0x189   : > { %v637_v32 = vrot.slane %v636_v30, 4  ;;  %v683_v61 = vsub.s32 %v680_v59, %v1067_v22 }
 0x18a   : > { %v646_v36 = vadd.f32 %v645_v34, %v644_v33 }
 0x18b   : > { %v638_v35 = vadd.f32 %v637_v32, %v636_v30 }
 0x18c   : > { %v647_v38 = vrot.slane %v646_v36, 4 }
 0x18d   : > { %v639_v37 = vrot.slane %v638_v35, 2 }
 0x18e   : > { %v648_v40 = vadd.f32 %v647_v38, %v646_v36 }
 0x18f   : > { %v640_v39 = vadd.f32 %v639_v37, %v638_v35 }
 0x190   : > { %v649_v43 = vrot.slane %v648_v40, 2 }
 0x191   : > { %v641_v42 = vrot.slane %v640_v39, 1 }
 0x192   : > { %v650_v46 = vadd.f32 %v649_v43, %v648_v40 }
 0x193   : > { %v642_v45 = vadd.f32 %v641_v42, %v640_v39 }
 0x194   : > { %v651_v48 = vrot.slane %v650_v46, 1 }
 0x195   : > { %v663_v47 = vadd.f32 %v662_v44, %v642_v45 }
 0x196   : > { %v652_v49 = vadd.f32 %v651_v48, %v650_v46 }
 0x197   : > { %v665_v16 = vsub.f32 0.0, %v663_v47 }
 0x198   : > { %v664_v51 = vadd.f32 %v662_v44, %v652_v49 }
 0x199   : > { %v667_v50 = vmul.f32 1.442695, %v665_v16 }
 0x19a   : > { %v666_v52 = vsub.f32 0.0, %v664_v51 }
 0x19b   : > { %849 = vpow2.f32 %v667_v50 }
 0x19c   : > { %v669_v53 = vmul.f32 1.442695, %v666_v52 }
 0x19e   : > { %851 = vpow2.f32 %v669_v53 }
 0x1a8   : > { %v850_v54 = vpop.eup %849 }
 0x1a9   : > { %v671_v55 = vadd.f32 1.0, %v850_v54 }
 0x1ab   : > { %v852_v56 = vpop.eup %851  ;;  %853 = vrcp.f32 %v671_v55 }
 0x1ac   : > { %v672_v57 = vadd.f32 1.0, %v852_v56 }
 0x1ae   : > { %855 = vrcp.f32 %v672_v57 }
 0x1b8   : > { %v854_v60 = vpop.eup %853 }
 0x1bb   : > { %v856_v62 = vpop.eup %855 }
 0x1bc   : > { %v677_v63 = vcombine.low %v854_v60, %v856_v62 }
 0x1be   : > { %v684_v0 = vrot.slane %v677_v63, %v683_v61 }
 0x1c0   : > { %v691_v1 = vrot.slane %v684_v0, %v683_v61 }
 0x1c2   : > { %697 = vst.msk [vmem:[%s274_s17] sm:$0x3] %vm695_vm0, %v691_v1 }
 0x1c3   : > { %870 = shalt.err (!%p867_p3)
}
 0x1c4   : > { %s871_s30 = scalar_lea.hbm %s711_s21, 32  ;;  %s875_s14 = scalar_lea.hbm %s1147_s7, 64 }
 0x1c5   : > { %p872_p4 = scmp.ne.s32.totalorder %s711_s21, %s871_s30  ;;  %p876_p9 = scmp.lt.s32.totalorder %s711_s21, %s1147_s7 }
 0x1c6   : > { %p877_p10 = scmp.lt.s32.totalorder %s875_s14, %s871_s30 }
 0x1c7   : > { %p873_p7 = pnand %p872_p4, %p1005_p5 }
 0x1c8   : > { %p878_p11 = por %p877_p10, %p876_p9 }
 0x1c9   : > { %p874_p8 = pneg %p873_p7 }
 0x1cb   : > { %p879_p12 = pnand %p878_p11, %p874_p8 }
 0x1cd   : > { %882 = shalt.err (!%p879_p12)
}
 0x1ce   : > { %799 = dma.vmem_to_hbm [thread:$0]  (%p1005_p5), %s714_s18, 32, %s711_s21, %s699_s22  }
 0x1cf PF: > { %p805_p13 = scmp.ge.s32.totalorder %s917_s29, 2  ;;  %s725_s17 = sand.u32 1, %s905_s26  }
 0x1d0   : > { %s726_s19 = scalar_lea.sflag [#allocation4], %s725_s17 }
 0x1d1   : > { %p802_p0 = pnand %p805_p13, %p1009_p6 }
 0x1d3   : > { %p803_p1 = pneg %p802_p0 }
 0x1d5   : > { %900 = dma.done.wait (%p803_p1), %s726_s19, 32  }
 0x1d6   : > { %902 = vsyncadd (%p803_p1), %s726_s19, 4294967264  ;;  %p19_p2 = scmp.ge.s32.totalorder %s992_s8, 4   ;;  %s1150_s26 = smov %s909_s27 }
 0x1d7   : > { %s1151_s27 = smov %s913_s28  ;;  %s1152_s28 = smov %s1003_s11 }
 0x1d8   : > { %s1153_s29 = smov %s992_s8  ;;  %21 = sbr.rel (!%p19_p2) target bundleno = 6 (0x6), region = 83 }
 0x1dd   :  { %731 = vsyncpa [#allocation4], 1 }
 0x1de   :  { %733 = vsyncpa [#allocation4 + $0x1], 1 }

</bundles_post_ra>
